<compile_context>
chip_gen: v6e
topology: v6e:2x2x1
jax: 0.10.0
libtpu: 0.0.40
codegen_flags: <defaults>
</compile_context>

<pallas_src>
import functools

import numpy as np

import jax
import jax.numpy as jnp
from jax.experimental import pallas as pl
from jax.experimental.pallas import tpu as pltpu


# ------------------------------ Pallas kernel -------------------------------

def _ffl_kernel(fake_ref, real_ref, kre_ref, kim_ref, w_ref, o_ref):
    # fake_ref/real_ref : (TM, HW)  f32 tiles of flattened images
    # kre_ref/kim_ref   : (HW, NC)  bf16 DFT basis (real/imag), VMEM-resident
    # w_ref             : (1, NC)   f32 folded focal weights, VMEM-resident
    # o_ref             : (8, NC)   f32 per-chunk partial sums (lane-dense)
    @pl.when(pl.program_id(1) == 0)
    def _():
        o_ref[...] = jnp.zeros_like(o_ref)

    tm = fake_ref.shape[0]

    # One (2*TM, HW) x (HW, NC) bf16 matmul per DFT component instead of two
    # (f32 concat is tile-aligned; cast to bf16 once before hitting the MXU).
    x = jnp.concatenate([fake_ref[...], real_ref[...]], axis=0).astype(jnp.bfloat16)
    zre = jnp.dot(x, kre_ref[...], preferred_element_type=jnp.float32)
    zim = jnp.dot(x, kim_ref[...], preferred_element_type=jnp.float32)
    mag = jnp.sqrt(zre * zre + zim * zim)

    diff = jnp.abs(mag[:tm] - mag[tm:])
    wd = w_ref[...] * diff                                         # (TM, NC)

    # Deferred reduction: pure VPU adds down to an (8, NC) slab; the cross-lane
    # reduce to a scalar happens once, in JAX, on the tiny partials array.
    o_ref[...] += jnp.sum(wd.reshape(tm // 8, 8, wd.shape[1]), axis=0)


# ----------------------- host-side constants (cached) -----------------------

def _build_constants(h, w, alpha):
    """bf16 Kronecker DFT basis (kept rfft2 columns) + folded focal weights."""
    wk = w // 2 + 1                                   # kept v in [0, w//2]
    yy = np.arange(h, dtype=np.float64)
    xx = np.arange(w, dtype=np.float64)
    uu = np.arange(h, dtype=np.float64)
    vv = np.arange(wk, dtype=np.float64)
    # phase[(y*w+x), (u*wk+v)] = 2*pi*(u*y/h + v*x/w)
    ph = 2.0 * np.pi * (np.outer(yy, uu)[:, None, :, None] / h
                        + np.outer(xx, vv)[None, :, None, :] / w)
    ph = ph.reshape(h * w, h * wk)
    kre = np.cos(ph)
    kim = -np.sin(ph)

    # Focal radial weight on the full (u, v) grid.
    cy, cx = h // 2, w // 2
    dy = np.arange(h, dtype=np.float64) - cy
    dx = np.arange(w, dtype=np.float64) - cx
    dist = np.sqrt(dy[:, None] ** 2 + dx[None, :] ** 2)
    weight = 1.0 + alpha * dist / dist.max()

    # Hermitian fold: a dropped bin (u', v') with v' > w//2 has the same
    # magnitude as its kept conjugate ((h-u')%h, w-v'); add its weight there.
    w_kept = weight[:, :wk].copy()
    u_conj = (h - np.arange(h)) % h
    for v in range(wk):
        v_conj = (w - v) % w
        if v_conj >= wk:                              # conjugate column was dropped
            w_kept[:, v] += weight[u_conj, v_conj]

    # Pad kept columns to a lane-dense multiple of 128 (zero basis columns give
    # zero magnitudes and carry zero weight -> no contribution).
    nc = max(128, ((h * wk + 127) // 128) * 128)
    pad = nc - h * wk
    kre = np.pad(kre, ((0, 0), (0, pad)))
    kim = np.pad(kim, ((0, 0), (0, pad)))
    wflat = np.pad(w_kept.reshape(1, h * wk), ((0, 0), (0, pad)))

    return (jnp.asarray(kre, dtype=jnp.bfloat16),
            jnp.asarray(kim, dtype=jnp.bfloat16),
            jnp.asarray(wflat, dtype=jnp.float32))


_CONST_CACHE = {}


def _get_constants(h, w, alpha):
    key = (int(h), int(w), float(alpha))
    if key not in _CONST_CACHE:
        _CONST_CACHE[key] = _build_constants(*key)
    return _CONST_CACHE[key]


# --------------------------------- glue -------------------------------------

@functools.partial(jax.jit, static_argnames=("block_m",))
def _ffl_pallas(fake, real, kre, kim, wgt, block_m=1024):
    n, c, h, w = fake.shape
    hw = h * w
    nc = kre.shape[1]
    m = n * c

    # NCHW -> (M, H*W): H, W are already the trailing dims, so this is a free reshape.
    f2 = fake.reshape(m, hw).astype(jnp.float32)
    r2 = real.reshape(m, hw).astype(jnp.float32)

    # Image-axis tile: multiple of 8 (f32 sublane), gated by a ~40 MiB VMEM budget
    # (basis x2 buffers + double-buffered input tiles + in-kernel intermediates).
    tm = max(8, (min(block_m, ((m + 7) // 8) * 8) // 8) * 8)

    def _vmem_est(t):
        basis = 2 * hw * nc * 2 * 2               # two bf16 components, x2 buffers
        io = 2 * t * hw * 4 * 2                   # fake+real f32 tiles, double-buffered
        inter = 2 * t * (2 * hw + 4 * 4 * nc)     # concat (bf16) + zre/zim/mag/diff (f32)
        return basis + io + inter

    while tm > 8 and _vmem_est(tm) > 40 * 1024 * 1024:
        tm -= 8

    # Grid: P megacore-parallel row chunks (v7x), S accumulation steps per chunk.
    steps = -(-m // tm)
    p = 2 if steps >= 2 else 1
    s = -(-steps // p)
    mp = p * s * tm
    if mp != m:
        # Zero rows have zero spectra -> contribute nothing to the sum.
        f2 = jnp.pad(f2, ((0, mp - m), (0, 0)))
        r2 = jnp.pad(r2, ((0, mp - m), (0, 0)))

    partials = pl.pallas_call(
        _ffl_kernel,
        out_shape=jax.ShapeDtypeStruct((p * 8, nc), jnp.float32),
        grid=(p, s),
        in_specs=[
            pl.BlockSpec((tm, hw), lambda pi, si: (pi * s + si, 0)),   # fake tile
            pl.BlockSpec((tm, hw), lambda pi, si: (pi * s + si, 0)),   # real tile
            pl.BlockSpec((hw, nc), lambda pi, si: (0, 0)),             # resident DFT basis (re)
            pl.BlockSpec((hw, nc), lambda pi, si: (0, 0)),             # resident DFT basis (im)
            pl.BlockSpec((1, nc), lambda pi, si: (0, 0)),              # resident focal weight
        ],
        out_specs=pl.BlockSpec((8, nc), lambda pi, si: (pi, 0)),       # per-chunk partial sums
        compiler_params=pltpu.CompilerParams(
            dimension_semantics=("parallel", "arbitrary"),
            vmem_limit_bytes=64 * 1024 * 1024,
        ),
    )(f2, r2, kre, kim, wgt)

    # Final cross-lane reduce on the tiny partials array + mean normalization.
    return jnp.sum(partials) / (n * c * h * w)


def focal_frequency_loss(fake, real, alpha=1.0, block_m=1024):
    assert fake.shape == real.shape and fake.ndim == 4
    _, _, h, w = fake.shape
    kre, kim, wgt = _get_constants(h, w, alpha)
    return _ffl_pallas(fake, real, kre, kim, wgt, block_m=block_m)


class FocalFrequencyLossPallas:
    """Pallas re-implementation of the forward pass of FocalFrequencyLoss."""

    def __init__(self, alpha: float = 1.0):
        self.alpha = float(alpha)

    def __call__(self, fake, real):
        return focal_frequency_loss(fake, real, alpha=self.alpha)


# ------------------------------ reference -----------------------------------

def _reference_ffl(fake, real, alpha=1.0):
    fake_mag = jnp.abs(jnp.fft.fft2(fake, axes=(-2, -1)))
    real_mag = jnp.abs(jnp.fft.fft2(real, axes=(-2, -1)))
    _, _, h, w = fake.shape
    cy, cx = h // 2, w // 2
    y, x = jnp.meshgrid(jnp.arange(h), jnp.arange(w), indexing="ij")
    dist = jnp.sqrt((y - cy).astype(jnp.float32) ** 2 + (x - cx).astype(jnp.float32) ** 2)
    weight = 1.0 + alpha * dist / jnp.max(dist)
    return jnp.mean(weight * jnp.abs(fake_mag - real_mag))


if __name__ == "__main__":
    key = jax.random.PRNGKey(0)
    k_fake, k_real = jax.random.split(key)

    # small NCHW inputs, as the PyTorch forward expects
    fake = jax.random.uniform(k_fake, (2, 4, 16, 16), jnp.float32)
    real = jax.random.uniform(k_real, (2, 4, 16, 16), jnp.float32)

    loss_fn = FocalFrequencyLossPallas(alpha=1.0)
    loss = loss_fn(fake, real)
    jax.block_until_ready(loss)

    ref = _reference_ffl(fake, real, alpha=1.0)
    assert jnp.isfinite(loss), "non-finite loss"
    assert abs(float(loss) - float(ref)) <= 3e-2 * abs(float(ref)) + 1e-3, (
        float(loss), float(ref))
    print("KERNEL_OK")
</pallas_src>

<mosaic_0001>
module attributes {stable_mosaic.version = 11 : i64} {
  func.func @_ffl_kernel(%arg0: i32, %arg1: i32, %arg2: memref<8x256xf32, #tpu.memory_space<vmem>>, %arg3: memref<8x256xf32, #tpu.memory_space<vmem>>, %arg4: memref<256x256xbf16, #tpu.memory_space<vmem>>, %arg5: memref<256x256xbf16, #tpu.memory_space<vmem>>, %arg6: memref<1x256xf32, #tpu.memory_space<vmem>>, %arg7: memref<8x256xf32, #tpu.memory_space<vmem>>) attributes {dimension_semantics = [#tpu.dimension_semantics<parallel>, #tpu.dimension_semantics<arbitrary>], iteration_bounds = array<i64: 1, 1>, scalar_prefetch = 0 : i64, scratch_operands = 0 : i64, tpu.core_type = #tpu.core_type<tc>, window_params = [{transform_indices = @transform_0, window_bounds = array<i64: 8, 256>}, {transform_indices = @transform_1, window_bounds = array<i64: 8, 256>}, {pipeline_mode = #tpu.pipeline_mode<synchronous>, transform_indices = @transform_2, window_bounds = array<i64: 256, 256>}, {pipeline_mode = #tpu.pipeline_mode<synchronous>, transform_indices = @transform_3, window_bounds = array<i64: 256, 256>}, {pipeline_mode = #tpu.pipeline_mode<synchronous>, transform_indices = @transform_4, window_bounds = array<i64: 1, 256>}, {transform_indices = @transform_5, window_bounds = array<i64: 8, 256>}]} {
    %c0_i32 = arith.constant 0 : i32
    %0 = arith.cmpi eq, %arg1, %c0_i32 : i32
    %1 = arith.extui %0 : i1 to i32
    %c0_i32_0 = arith.constant 0 : i32
    %2 = arith.cmpi ne, %1, %c0_i32_0 : i32
    scf.if %2 {
      %cst_16 = arith.constant 0.000000e+00 : f32
      %27 = vector.broadcast %cst_16 : f32 to vector<8x256xf32>
      %c0_17 = arith.constant 0 : index
      %c0_18 = arith.constant 0 : index
      %28 = vector.load %arg7[%c0_17, %c0_18] : memref<8x256xf32, #tpu.memory_space<vmem>>, vector<8x256xf32>
      tpu.vector_store %arg7[%c0_17, %c0_18], %27 {strides = array<i32>} : memref<8x256xf32, #tpu.memory_space<vmem>>, vector<8x256xf32>,
    } else {
    }
    %c0 = arith.constant 0 : index
    %c0_1 = arith.constant 0 : index
    %3 = vector.load %arg2[%c0, %c0_1] : memref<8x256xf32, #tpu.memory_space<vmem>>, vector<8x256xf32>
    %c0_2 = arith.constant 0 : index
    %c0_3 = arith.constant 0 : index
    %4 = vector.load %arg3[%c0_2, %c0_3] : memref<8x256xf32, #tpu.memory_space<vmem>>, vector<8x256xf32>
    %5 = tpu.concatenate %3, %4 in 0 : vector<8x256xf32>, vector<8x256xf32> -> vector<16x256xf32>
    %6 = arith.truncf %5 : vector<16x256xf32> to vector<16x256xbf16>
    %c0_4 = arith.constant 0 : index
    %c0_5 = arith.constant 0 : index
    %7 = vector.load %arg4[%c0_4, %c0_5] : memref<256x256xbf16, #tpu.memory_space<vmem>>, vector<256x256xbf16>
    %cst = arith.constant dense<0.000000e+00> : vector<16x256xf32>
    %8 = tpu.matmul %6, %7, %cst {dimension_numbers = #tpu.dot_dimension_numbers<[1], [0], [0], [1], [0, 0, 1, 1], [], []>} : vector<16x256xbf16>, vector<256x256xbf16>, vector<16x256xf32> -> vector<16x256xf32>
    %c0_6 = arith.constant 0 : index
    %c0_7 = arith.constant 0 : index
    %9 = vector.load %arg5[%c0_6, %c0_7] : memref<256x256xbf16, #tpu.memory_space<vmem>>, vector<256x256xbf16>
    %cst_8 = arith.constant dense<0.000000e+00> : vector<16x256xf32>
    %10 = tpu.matmul %6, %9, %cst_8 {dimension_numbers = #tpu.dot_dimension_numbers<[1], [0], [0], [1], [0, 0, 1, 1], [], []>} : vector<16x256xbf16>, vector<256x256xbf16>, vector<16x256xf32> -> vector<16x256xf32>
    %11 = arith.mulf %8, %8 : vector<16x256xf32>
    %12 = arith.mulf %10, %10 : vector<16x256xf32>
    %13 = arith.addf %11, %12 : vector<16x256xf32>
    %14 = math.sqrt %13 : vector<16x256xf32>
    %15 = vector.extract_strided_slice %14 {offsets = [0, 0], sizes = [8, 256], strides = [1, 1]} : vector<16x256xf32> to vector<8x256xf32>
    %16 = vector.extract_strided_slice %14 {offsets = [8, 0], sizes = [8, 256], strides = [1, 1]} : vector<16x256xf32> to vector<8x256xf32>
    %17 = arith.subf %15, %16 : vector<8x256xf32>
    %18 = math.absf %17 : vector<8x256xf32>
    %c0_9 = arith.constant 0 : index
    %c0_10 = arith.constant 0 : index
    %19 = vector.load %arg6[%c0_9, %c0_10] : memref<1x256xf32, #tpu.memory_space<vmem>>, vector<1x256xf32>
    %20 = vector.broadcast %19 : vector<1x256xf32> to vector<8x256xf32>
    %21 = arith.mulf %20, %18 : vector<8x256xf32>
    %c0_11 = arith.constant 0 : index
    %c0_12 = arith.constant 0 : index
    %22 = vector.load %arg7[%c0_11, %c0_12] : memref<8x256xf32, #tpu.memory_space<vmem>>, vector<8x256xf32>
    %23 = vector.shape_cast %21 : vector<8x256xf32> to vector<1x8x256xf32>
    %cst_13 = arith.constant dense<0.000000e+00> : vector<8x256xf32>
    %24 = vector.multi_reduction <add>, %23, %cst_13 [0] : vector<1x8x256xf32> to vector<8x256xf32>
    %25 = arith.addf %22, %24 : vector<8x256xf32>
    %c0_14 = arith.constant 0 : index
    %c0_15 = arith.constant 0 : index
    %26 = vector.load %arg7[%c0_14, %c0_15] : memref<8x256xf32, #tpu.memory_space<vmem>>, vector<8x256xf32>
    tpu.vector_store %arg7[%c0_14, %c0_15], %25 {strides = array<i32>} : memref<8x256xf32, #tpu.memory_space<vmem>>, vector<8x256xf32>,
    return
  }
  func.func @transform_0(%arg0: i32, %arg1: i32) -> (i32, i32) {
    %c1_i32 = arith.constant 1 : i32
    %0 = arith.muli %arg0, %c1_i32 : i32
    %1 = arith.addi %0, %arg1 : i32
    %c0_i32 = arith.constant 0 : i32
    %c0_i32_0 = arith.constant 0 : i32
    return %1, %c0_i32 : i32, i32
  }
  func.func @transform_1(%arg0: i32, %arg1: i32) -> (i32, i32) {
    %c1_i32 = arith.constant 1 : i32
    %0 = arith.muli %arg0, %c1_i32 : i32
    %1 = arith.addi %0, %arg1 : i32
    %c0_i32 = arith.constant 0 : i32
    %c0_i32_0 = arith.constant 0 : i32
    return %1, %c0_i32 : i32, i32
  }
  func.func @transform_2(%arg0: i32, %arg1: i32) -> (i32, i32) {
    %c0_i32 = arith.constant 0 : i32
    %c0_i32_0 = arith.constant 0 : i32
    %c0_i32_1 = arith.constant 0 : i32
    return %c0_i32, %c0_i32_0 : i32, i32
  }
  func.func @transform_3(%arg0: i32, %arg1: i32) -> (i32, i32) {
    %c0_i32 = arith.constant 0 : i32
    %c0_i32_0 = arith.constant 0 : i32
    %c0_i32_1 = arith.constant 0 : i32
    return %c0_i32, %c0_i32_0 : i32, i32
  }
  func.func @transform_4(%arg0: i32, %arg1: i32) -> (i32, i32) {
    %c0_i32 = arith.constant 0 : i32
    %c0_i32_0 = arith.constant 0 : i32
    %c0_i32_1 = arith.constant 0 : i32
    return %c0_i32, %c0_i32_0 : i32, i32
  }
  func.func @transform_5(%arg0: i32, %arg1: i32) -> (i32, i32) {
    %c0_i32 = arith.constant 0 : i32
    %c0_i32_0 = arith.constant 0 : i32
    return %arg0, %c0_i32 : i32, i32
  }
}

</mosaic_0001>

<bundles_post_ra>
// kernel: _ffl_pallas.1
= control target key start
LH: loop header
LB: loop body
LE: loop exit
PB: predicated region body
PF: predicated region fallthrough
CT: control target
= control target key end

     0   :  { %10 = vsyncpa [#allocation3], 0  ;;  %s833_s18 = smov [#allocation2]   ;;  %s988_s0 = inlined_call_operand.vmem [shape: f32[8,256], index: 0, kind: input, shape index: {}]   ;;  %s989_s1 = inlined_call_operand.vmem [shape: f32[8,256], index: 1, kind: input, shape index: {}]   ;;  %s990_s2 = inlined_call_operand.vmem [shape: bf16[256,256], index: 2, kind: input, shape index: {}]   ;;  %s991_s3 = inlined_call_operand.hbm [shape: bf16[256,256], index: 3, kind: input, shape index: {}]   ;;  %s992_s4 = inlined_call_operand.vmem [shape: f32[1,256], index: 4, kind: input, shape index: {}]   ;;  %s993_s5 = inlined_call_operand.vmem [shape: f32[8,256], index: 5, kind: output, shape index: {}]  }
   0x1   :  { %s36_s19 = sshll.u32 %s833_s18, 4  ;;  %s37_s19 = int_to_ptr.vmem [resolvable:$true] %s36_s19 }
   0x2   :  { %s819_s20 = scalar_lea.vmem %s37_s19, 4096  ;;  %p824_p1 = scmp.lt.s32.totalorder %s37_s19, %s37_s19 }
   0x3   :  { %p820_p0 = scmp.ne.s32.totalorder %s37_s19, %s819_s20  ;;  %p825_p2 = scmp.lt.s32.totalorder %s819_s20, %s819_s20 }
   0x5   :  { %p826_p3 = por %p825_p2, %p824_p1 }
   0x7   :  { %p827_p4 = pnand %p826_p3, %p820_p0 }
   0x9   :  { %830 = shalt.err (!%p827_p4)
}
   0xa   :  { %s834_s21 = smov 128   ;;  %s835_s22 = smov 8  }
   0xb   :  { %42 = dma.hbm_to_vmem [thread:$0]  %s991_s3, 4096, %s37_s19, [#allocation3], %s834_s21, %s834_s21, %s835_s22  }
   0xc   :  { %831 = dma.done.wait [#allocation3], 4096  }
   0xd   :  { %832 = vsyncadd [#allocation3], 4294963200  ;;  %v707_v0 = vld [vmem:[%s990_s2 + $0x74] ss:$8 sps:$4 sm:$0xff]   ;;  %v711_v2 = vld [vmem:[%s990_s2 + $0x70] ss:$8 sps:$4 sm:$0xff]  }
   0xe   :  { %v709_v1 = vld [vmem:[#allocation2 + $0x74] ss:$8 sps:$4 sm:$0xff]   ;;  %278 = vmatprep.subr.bf16.mxu0 %v707_v0  ;;  %v712_v3 = vld [vmem:[#allocation2 + $0x70] ss:$8 sps:$4 sm:$0xff]   ;;  %v713_v4 = vld [vmem:[%s990_s2 + $0x64] ss:$8 sps:$4 sm:$0xff]  }
   0xf   :  { %513 = vmatprep.subr.bf16.mxu1 %v709_v1  ;;  %279 = vmatpush1.bf16.msra.mxu0 %v711_v2  ;;  %v715_v5 = vld [vmem:[#allocation2 + $0x64] ss:$8 sps:$4 sm:$0xff]   ;;  %v717_v6 = vld [vmem:[%s990_s2 + $0x60] ss:$8 sps:$4 sm:$0xff]   ;;  %v719_v8 = vld [vmem:[%s990_s2 + $0x54] ss:$8 sps:$4 sm:$0xff]  }
  0x10   :  { %514 = vmatpush1.bf16.msra.mxu1 %v712_v3  ;;  %280 = vmatprep.subr.bf16.mxu0 %v713_v4  ;;  %v718_v7 = vld [vmem:[#allocation2 + $0x60] ss:$8 sps:$4 sm:$0xff]   ;;  %v721_v9 = vld [vmem:[#allocation2 + $0x54] ss:$8 sps:$4 sm:$0xff]   ;;  %v723_v10 = vld [vmem:[%s990_s2 + $0x50] ss:$8 sps:$4 sm:$0xff]  }
  0x11   :  { %515 = vmatprep.subr.bf16.mxu1 %v715_v5  ;;  %v724_v11 = vld [vmem:[#allocation2 + $0x50] ss:$8 sps:$4 sm:$0xff]   ;;  %v725_v12 = vld [vmem:[%s990_s2 + $0x44] ss:$8 sps:$4 sm:$0xff]   ;;  %v729_v14 = vld [vmem:[%s990_s2 + $0x40] ss:$8 sps:$4 sm:$0xff]  }
  0x12   :  { %v727_v13 = vld [vmem:[#allocation2 + $0x44] ss:$8 sps:$4 sm:$0xff]   ;;  %v730_v15 = vld [vmem:[#allocation2 + $0x40] ss:$8 sps:$4 sm:$0xff]   ;;  %v731_v16 = vld [vmem:[%s990_s2 + $0x34] ss:$8 sps:$4 sm:$0xff]  }
  0x13   :  { %281 = vmatpush1.bf16.msra.mxu0 %v717_v6  ;;  %v733_v17 = vld [vmem:[#allocation2 + $0x34] ss:$8 sps:$4 sm:$0xff]   ;;  %v735_v18 = vld [vmem:[%s990_s2 + $0x30] ss:$8 sps:$4 sm:$0xff]   ;;  %v737_v20 = vld [vmem:[%s990_s2 + $0x24] ss:$8 sps:$4 sm:$0xff]  }
  0x14   :  { %516 = vmatpush1.bf16.msra.mxu1 %v718_v7  ;;  %282 = vmatprep.subr.bf16.mxu0 %v719_v8  ;;  %v736_v19 = vld [vmem:[#allocation2 + $0x30] ss:$8 sps:$4 sm:$0xff]   ;;  %v739_v21 = vld [vmem:[#allocation2 + $0x24] ss:$8 sps:$4 sm:$0xff]   ;;  %v741_v22 = vld [vmem:[%s990_s2 + $0x20] ss:$8 sps:$4 sm:$0xff]  }
  0x15   :  { %517 = vmatprep.subr.bf16.mxu1 %v721_v9  ;;  %v742_v23 = vld [vmem:[#allocation2 + $0x20] ss:$8 sps:$4 sm:$0xff]   ;;  %v743_v24 = vld [vmem:[%s990_s2 + $0x14] ss:$8 sps:$4 sm:$0xff]   ;;  %v747_v26 = vld [vmem:[%s990_s2 + $0x10] ss:$8 sps:$4 sm:$0xff]  }
  0x16   :  { %v745_v25 = vld [vmem:[#allocation2 + $0x14] ss:$8 sps:$4 sm:$0xff]   ;;  %v748_v27 = vld [vmem:[#allocation2 + $0x10] ss:$8 sps:$4 sm:$0xff]   ;;  %v749_v28 = vld [vmem:[%s990_s2 + $0x4] ss:$8 sps:$4 sm:$0xff]  }
  0x17   :  { %283 = vmatpush1.bf16.msra.mxu0 %v723_v10  ;;  %v751_v29 = vld [vmem:[#allocation2 + $0x4] ss:$8 sps:$4 sm:$0xff]   ;;  %v753_v30 = vld [vmem:[%s990_s2] ss:$8 sps:$4 sm:$0xff]   ;;  %v755_v32 = vld [vmem:[%s990_s2 + $0xf4] ss:$8 sps:$4 sm:$0xff]  }
  0x18   :  { %518 = vmatpush1.bf16.msra.mxu1 %v724_v11  ;;  %284 = vmatprep.subr.bf16.mxu0 %v725_v12  ;;  %v754_v31 = vld [vmem:[#allocation2] ss:$8 sps:$4 sm:$0xff]   ;;  %v757_v33 = vld [vmem:[#allocation2 + $0xf4] ss:$8 sps:$4 sm:$0xff]   ;;  %v759_v34 = vld [vmem:[%s990_s2 + $0xf0] ss:$8 sps:$4 sm:$0xff]  }
  0x19   :  { %519 = vmatprep.subr.bf16.mxu1 %v727_v13  ;;  %v760_v35 = vld [vmem:[#allocation2 + $0xf0] ss:$8 sps:$4 sm:$0xff]   ;;  %v761_v36 = vld [vmem:[%s990_s2 + $0xe4] ss:$8 sps:$4 sm:$0xff]   ;;  %v765_v38 = vld [vmem:[%s990_s2 + $0xe0] ss:$8 sps:$4 sm:$0xff]  }
  0x1a   :  { %v763_v37 = vld [vmem:[#allocation2 + $0xe4] ss:$8 sps:$4 sm:$0xff]   ;;  %v766_v39 = vld [vmem:[#allocation2 + $0xe0] ss:$8 sps:$4 sm:$0xff]   ;;  %v767_v40 = vld [vmem:[%s990_s2 + $0xd4] ss:$8 sps:$4 sm:$0xff]  }
  0x1b   :  { %285 = vmatpush1.bf16.msra.mxu0 %v729_v14  ;;  %v769_v41 = vld [vmem:[#allocation2 + $0xd4] ss:$8 sps:$4 sm:$0xff]   ;;  %v771_v42 = vld [vmem:[%s990_s2 + $0xd0] ss:$8 sps:$4 sm:$0xff]   ;;  %v773_v44 = vld [vmem:[%s990_s2 + $0xc4] ss:$8 sps:$4 sm:$0xff]  }
  0x1c   :  { %520 = vmatpush1.bf16.msra.mxu1 %v730_v15  ;;  %286 = vmatprep.subr.bf16.mxu0 %v731_v16  ;;  %v772_v43 = vld [vmem:[#allocation2 + $0xd0] ss:$8 sps:$4 sm:$0xff]   ;;  %v775_v45 = vld [vmem:[#allocation2 + $0xc4] ss:$8 sps:$4 sm:$0xff]   ;;  %v777_v48 = vld [vmem:[%s990_s2 + $0xc0] ss:$8 sps:$4 sm:$0xff]  }
  0x1d   :  { %521 = vmatprep.subr.bf16.mxu1 %v733_v17  ;;  %v81_v46 = vld [vmem:[%s988_s0 + $0x8] sm:$0xff]  ;;  %v779_v51 = vld [vmem:[%s990_s2 + $0xb4] ss:$8 sps:$4 sm:$0xff]   ;;  %v783_v53 = vld [vmem:[%s990_s2 + $0xb0] ss:$8 sps:$4 sm:$0xff]  }
  0x1e   :  { %v83_v47 = vld [vmem:[%s989_s1 + $0x8] sm:$0xff]  ;;  %v781_v52 = vld [vmem:[#allocation2 + $0xb4] ss:$8 sps:$4 sm:$0xff]   ;;  %v784_v54 = vld [vmem:[#allocation2 + $0xb0] ss:$8 sps:$4 sm:$0xff]  }
  0x1f   :  { %287 = vmatpush1.bf16.msra.mxu0 %v735_v18  ;;  %v778_v49 = vld [vmem:[#allocation2 + $0xc0] ss:$8 sps:$4 sm:$0xff]   ;;  %v85_v50 = vpack.c.bf16 %v83_v47, %v81_v46  ;;  %v785_v55 = vld [vmem:[%s990_s2 + $0xa4] ss:$8 sps:$4 sm:$0xff]   ;;  %v791_v59 = vld [vmem:[%s990_s2 + $0x94] ss:$8 sps:$4 sm:$0xff]  }
  0x20   :  { %522 = vmatpush1.bf16.msra.mxu1 %v736_v19  ;;  %288 = vmatprep.subr.bf16.mxu0 %v737_v20  ;;  %v787_v56 = vld [vmem:[#allocation2 + $0xa4] ss:$8 sps:$4 sm:$0xff]   ;;  %v789_v57 = vld [vmem:[%s990_s2 + $0xa0] ss:$8 sps:$4 sm:$0xff]   ;;  %v793_v60 = vld [vmem:[#allocation2 + $0x94] ss:$8 sps:$4 sm:$0xff]  }
  0x21   :  { %523 = vmatprep.subr.bf16.mxu1 %v739_v21  ;;  %310 = vmatprep.mubr.bf16.mxu0 %v85_v50  ;;  %v790_v58 = vld [vmem:[#allocation2 + $0xa0] ss:$8 sps:$4 sm:$0xff]   ;;  %v795_v61 = vld [vmem:[%s990_s2 + $0x90] ss:$8 sps:$4 sm:$0xff]   ;;  %v797_v63 = vld [vmem:[%s990_s2 + $0x84] ss:$8 sps:$4 sm:$0xff]  }
  0x22   :  { %545 = vmatprep.mubr.bf16.mxu1 %v85_v50  ;;  %v796_v62 = vld [vmem:[#allocation2 + $0x90] ss:$8 sps:$4 sm:$0xff]   ;;  %v799_v0 = vld [vmem:[#allocation2 + $0x84] ss:$8 sps:$4 sm:$0xff]   ;;  %v801_v1 = vld [vmem:[%s990_s2 + $0x80] ss:$8 sps:$4 sm:$0xff]  }
  0x23   :  { %289 = vmatpush1.bf16.msra.mxu0 %v741_v22  ;;  %v802_v2 = vld [vmem:[#allocation2 + $0x80] ss:$8 sps:$4 sm:$0xff]  }
  0x24   :  { %524 = vmatpush1.bf16.msra.mxu1 %v742_v23  ;;  %290 = vmatprep.subr.bf16.mxu0 %v743_v24  ;;  %v80_v3 = vld [vmem:[%s988_s0] sm:$0xff] }
  0x25   :  { %525 = vmatprep.subr.bf16.mxu1 %v745_v25  ;;  %v82_v4 = vld [vmem:[%s989_s1] sm:$0xff] }
  0x26   :  { %v84_v5 = vpack.c.bf16 %v82_v4, %v80_v3 }
  0x27   :  { %291 = vmatpush1.bf16.msra.mxu0 %v747_v26  ;;  %v602_v26 = vlaneseq }
  0x28   :  { %526 = vmatpush1.bf16.msra.mxu1 %v748_v27  ;;  %292 = vmatprep.subr.bf16.mxu0 %v749_v28 }
  0x29   :  { %527 = vmatprep.subr.bf16.mxu1 %v751_v29  ;;  %v603_v28 = vshrl.u32 %v602_v26, 7 }
  0x2b   :  { %293 = vmatpush1.bf16.msra.mxu0 %v753_v30 }
  0x2c   :  { %528 = vmatpush1.bf16.msra.mxu1 %v754_v31  ;;  %294 = vmatprep.subr.bf16.mxu0 %v755_v32  ;;  %v604_v32 = vsub.s32 0, %v603_v28 }
  0x2d   :  { %529 = vmatprep.subr.bf16.mxu1 %v757_v33  ;;  %v608_v33 = vsub.s32 1, %v603_v28 }
  0x2f   :  { %295 = vmatpush2.bf16.msra.mxu0 %v759_v34 }
  0x30   :  { %530 = vmatpush2.bf16.msra.mxu1 %v760_v35  ;;  %296 = vmatprep.subr.bf16.mxu0 %v761_v36 }
  0x31   :  { %531 = vmatprep.subr.bf16.mxu1 %v763_v37 }
  0x33   :  { %297 = vmatpush2.bf16.msra.mxu0 %v765_v38 }
  0x34   :  { %532 = vmatpush2.bf16.msra.mxu1 %v766_v39  ;;  %298 = vmatprep.subr.bf16.mxu0 %v767_v40 }
  0x35   :  { %533 = vmatprep.subr.bf16.mxu1 %v769_v41 }
  0x37   :  { %299 = vmatpush2.bf16.msra.mxu0 %v771_v42  ;;  %v600_v42 = vld [vmem:[%s992_s4] sm:$0x3] }
  0x38   :  { %534 = vmatpush2.bf16.msra.mxu1 %v772_v43  ;;  %300 = vmatprep.subr.bf16.mxu0 %v773_v44 }
  0x39   :  { %535 = vmatprep.subr.bf16.mxu1 %v775_v45 }
  0x3b   :  { %301 = vmatpush2.bf16.msra.mxu0 %v777_v48 }
  0x3c   :  { %536 = vmatpush2.bf16.msra.mxu1 %v778_v49  ;;  %302 = vmatprep.subr.bf16.mxu0 %v779_v51  ;;  %v605_v51 = vrot.slane %v600_v42, %v604_v32 }
  0x3d   :  { %537 = vmatprep.subr.bf16.mxu1 %v781_v52 }
  0x3f   :  { %303 = vmatpush2.bf16.msra.mxu0 %v783_v53 }
  0x40   :  { %538 = vmatpush2.bf16.msra.mxu1 %v784_v54  ;;  %304 = vmatprep.subr.bf16.mxu0 %v785_v55  ;;  %v609_v54 = vrot.slane %v600_v42, %v608_v33 }
  0x41   :  { %539 = vmatprep.subr.bf16.mxu1 %v787_v56 }
  0x43   :  { %305 = vmatpush2.bf16.msra.mxu0 %v789_v57 }
  0x44   :  { %540 = vmatpush2.bf16.msra.mxu1 %v790_v58  ;;  %306 = vmatprep.subr.bf16.mxu0 %v791_v59 }
  0x45   :  { %541 = vmatprep.subr.bf16.mxu1 %v793_v60 }
  0x47   :  { %307 = vmatpush2.bf16.msra.mxu0 %v795_v61 }
  0x48   :  { %542 = vmatpush2.bf16.msra.mxu1 %v796_v62  ;;  %308 = vmatprep.subr.bf16.mxu0 %v797_v63 }
  0x49   :  { %543 = vmatprep.subr.bf16.mxu1 %v799_v0 }
  0x4b   :  { %309 = vmatpush2.bf16.msra.mxu0 %v801_v1 }
  0x4c   :  { %544 = vmatpush2.bf16.msra.mxu1 %v802_v2 }
  0x4e   :  { %311 = vmatmul.mubr.bf16.vlgmr.msra.gmra.mxu0 %v84_v5 }
  0x4f   :  { %546 = vmatmul.mubr.bf16.vlgmr.msra.gmra.mxu1 %v84_v5 }
 0x10e   :  { %v312_v6 = vpop.f32.mrf.mxu0 }
 0x10f   :  { %v547_v7 = vpop.f32.mrf.mxu1  ;;  %v556_v8 = vmul.f32 %v312_v6, %v312_v6 }
 0x110   :  { %v560_v9 = vmul.f32 %v547_v7, %v547_v7  ;;  %v314_v10 = vpop.f32.mrf.mxu0 }
 0x111   :  { %v549_v11 = vpop.f32.mrf.mxu1  ;;  %v557_v13 = vmul.f32 %v314_v10, %v314_v10 }
 0x112   :  { %v564_v12 = vadd.f32 %v560_v9, %v556_v8  ;;  %v561_v14 = vmul.f32 %v549_v11, %v549_v11  ;;  %v316_v15 = vpop.f32.mrf.mxu0 }
 0x113   :  { %v551_v16 = vpop.f32.mrf.mxu1  ;;  %v558_v18 = vmul.f32 %v316_v15, %v316_v15 }
 0x114   :  { %803 = vrsqrt.f32 %v564_v12  ;;  %v565_v17 = vadd.f32 %v561_v14, %v557_v13  ;;  %v562_v19 = vmul.f32 %v551_v16, %v551_v16  ;;  %v318_v20 = vpop.f32.mrf.mxu0  ;;  %vm570_vm0 = vcmp.eq.f32.partialorder %v564_v12, inf }
 0x115   :  { %v553_v21 = vpop.f32.mrf.mxu1  ;;  %v559_v22 = vmul.f32 %v318_v20, %v318_v20  ;;  %vm572_vm1 = vcmp.eq.f32.partialorder %v564_v12, 0.0  ;;  %v573_v35 = vand.u32 2147483648, %v564_v12 }
 0x116   :  { %v563_v23 = vmul.f32 %v553_v21, %v553_v21  ;;  %805 = vrsqrt.f32 %v565_v17  ;;  %v566_v24 = vadd.f32 %v562_v19, %v558_v18  ;;  %vm577_vm2 = vcmp.eq.f32.partialorder %v565_v17, inf }
 0x117   :  { %vm579_vm3 = vcmp.eq.f32.partialorder %v565_v17, 0.0  ;;  %v580_v38 = vand.u32 2147483648, %v565_v17 }
 0x118   :  { %v567_v25 = vadd.f32 %v563_v23, %v559_v22  ;;  %807 = vrsqrt.f32 %v566_v24  ;;  %vm584_vm4 = vcmp.eq.f32.partialorder %v566_v24, inf  ;;  %v587_v41 = vand.u32 2147483648, %v566_v24 }
 0x119   :  { %vm586_vm5 = vcmp.eq.f32.partialorder %v566_v24, 0.0 }
 0x11a   :  { %809 = vrsqrt.f32 %v567_v25  ;;  %vm591_vm6 = vcmp.eq.f32.partialorder %v567_v25, inf  ;;  %v594_v45 = vand.u32 2147483648, %v567_v25  ;;  %vm593_vm7 = vcmp.eq.f32.partialorder %v567_v25, 0.0 }
 0x121   :  { %v804_v27 = vpop.eup %803 }
 0x122   :  { %v569_v30 = vmul.f32 %v804_v27, %v564_v12 }
 0x123   :  { %v806_v29 = vpop.eup %805 }
 0x124   :  { %v576_v31 = vmul.f32 %v806_v29, %v565_v17  ;;  %v571_v37 = vsel %vm570_vm0, %v564_v12, %v569_v30 }
 0x125   :  { %v808_v34 = vpop.eup %807  ;;  %v574_v46 = vsel %vm572_vm1, %v573_v35, %v571_v37 }
 0x126   :  { %v583_v39 = vmul.f32 %v808_v34, %v566_v24  ;;  %v578_v40 = vsel %vm577_vm2, %v565_v17, %v576_v31 }
 0x127   :  { %v810_v36 = vpop.eup %809  ;;  %v581_v49 = vsel %vm579_vm3, %v580_v38, %v578_v40 }
 0x128   :  { %v590_v43 = vmul.f32 %v810_v36, %v567_v25  ;;  %v585_v44 = vsel %vm584_vm4, %v566_v24, %v583_v39 }
 0x129   :  { %v588_v47 = vsel %vm586_vm5, %v587_v41, %v585_v44 }
 0x12a   :  { %v592_v48 = vsel %vm591_vm6, %v567_v25, %v590_v43  ;;  %v596_v50 = vsub.f32 %v574_v46, %v588_v47 }
 0x12b   :  { %v595_v52 = vsel %vm593_vm7, %v594_v45, %v592_v48 }
 0x12c   :  { %v597_v53 = vsub.f32 %v581_v49, %v595_v52  ;;  %v598_v55 = vand.u32 2147483647, %v596_v50 }
 0x12e   :  { %v599_v56 = vand.u32 2147483647, %v597_v53  ;;  %v612_v57 = vmul.f32 %v605_v51, %v598_v55 }
 0x130   :  { %v613_v58 = vmul.f32 %v609_v54, %v599_v56  ;;  %620 = vst [vmem:[%s993_s5] sm:$0xff] %v612_v57 }
 0x132   :  { %621 = vst [vmem:[%s993_s5 + $0x8] sm:$0xff] %v613_v58 }
 0x133   :  { %626 = vsyncpa [#allocation3], 1 }

</bundles_post_ra>
